<compile_context>
chip_gen: v7x
topology: tpu7x:2x2x1
jax: 0.10.0
libtpu: 0.0.40
codegen_flags: <defaults>
</compile_context>

<pallas_src>
import math

import jax
import jax.numpy as jnp
from jax.experimental import pallas as pl
from jax.experimental.pallas import tpu as pltpu


def _round_up(n: int, m: int) -> int:
    return ((n + m - 1) // m) * m


def _make_mlp_kernel(n_sub: int, sub: int):
    """Build the fused MLP kernel body with `n_sub` static hidden sub-chunks."""

    def kernel(x_ref, w_fc_ref, w_proj_ref, o_ref, acc_ref):
        # x_ref:      (tm, C)        activation tile
        # w_fc_ref:   (C, th)        W_fc^T columns for this hidden tile
        # w_proj_ref: (th, C)        W_proj^T rows for this hidden tile
        # o_ref:      (tm, C)        output tile (written on last reduction step)
        # acc_ref:    (tm, C) f32    accumulator scratch
        h_idx = pl.program_id(1)

        @pl.when(h_idx == 0)
        def _():
            acc_ref[...] = jnp.zeros_like(acc_ref)

        x = x_ref[...]
        # Static sub-chunk loop: lets the scheduler overlap matmul-1 of chunk
        # k+1 with the relu^2 + cast of chunk k.
        for k in range(n_sub):
            lo, hi = k * sub, (k + 1) * sub
            h = jnp.dot(x, w_fc_ref[:, lo:hi], preferred_element_type=jnp.float32)
            h = jnp.maximum(h, 0.0)
            h = (h * h).astype(x.dtype)
            acc_ref[...] += jnp.dot(
                h, w_proj_ref[lo:hi, :], preferred_element_type=jnp.float32
            )

        @pl.when(h_idx == pl.num_programs(1) - 1)
        def _():
            o_ref[...] = acc_ref[...].astype(o_ref.dtype)

    return kernel


def _vmem_estimate(tm: int, th: int, C: int, itemsize: int) -> int:
    io = 2 * (2 * tm * C * itemsize)      # x + out blocks, double-buffered
    wt = 2 * (2 * C * th * itemsize)      # both weight blocks, double-buffered
    acc = tm * C * 4                      # f32 accumulator scratch
    return io + wt + acc


def _choose_tiles(M: int, H: int, C: int, itemsize: int):
    # Row tile: big enough to stay MXU-bound against the streamed weights
    # (>=1024 when M allows it), but always >= 2 row blocks so the "parallel"
    # axis can shard across v7x's two TensorCores.
    if M >= 2048:
        tm = 1024
    elif M >= 1024:
        tm = 512
    elif M >= 512:
        tm = 256
    else:
        tm = max(16, _round_up(M, 16))    # single padded block for small M

    # Hidden tile: multiple of 256 (v6e/v7x MXU tile); 512 preferred.
    if H % 512 == 0:
        th = 512
    elif H % 256 == 0:
        th = 256
    elif H >= 512:
        th = 512                          # H will be zero-padded up
    else:
        th = max(128, _round_up(H, 128))

    # Keep the working set comfortably inside v7x's 64 MiB VMEM per core.
    budget = 40 << 20
    while _vmem_estimate(tm, th, C, itemsize) > budget and tm > 256:
        tm //= 2
    while _vmem_estimate(tm, th, C, itemsize) > budget and th > 256:
        th //= 2
    return tm, th


def mlp_forward(x, w_fc, w_proj, *, tm: int | None = None, th: int | None = None):
    """Fused MLP forward.

    x:      (..., C)
    w_fc:   (H, C)   = c_fc.weight   (H = 4*C)
    w_proj: (C, H)   = c_proj.weight
    """
    *lead, C = x.shape
    H, C_in = w_fc.shape
    assert C_in == C and w_proj.shape == (C, H)

    dtype = x.dtype
    itemsize = jnp.dtype(dtype).itemsize

    # CastedLinear semantics: weights computed in the activation dtype.
    # Pre-transpose once (one-time XLA copy) so the kernel does plain
    # (M,K)x(K,N) matmuls with no in-loop RHS transpose.
    w_fc_t = w_fc.astype(dtype).T        # (C, H)
    w_proj_t = w_proj.astype(dtype).T    # (H, C)

    M = math.prod(lead) if lead else 1
    x2 = x.reshape(M, C)

    auto_tm, auto_th = _choose_tiles(M, H, C, itemsize)
    tm = auto_tm if tm is None else tm
    th = auto_th if th is None else th

    # Pad M / H up to tile multiples; zero rows / zero hidden units change
    # nothing (relu(0)^2 = 0), so awkward shapes degrade gracefully.
    Mp, Hp = _round_up(M, tm), _round_up(H, th)
    if Mp != M:
        x2 = jnp.pad(x2, ((0, Mp - M), (0, 0)))
    if Hp != H:
        w_fc_t = jnp.pad(w_fc_t, ((0, 0), (0, Hp - H)))
        w_proj_t = jnp.pad(w_proj_t, ((0, Hp - H), (0, 0)))

    grid = (Mp // tm, Hp // th)           # (parallel rows, hidden reduction)

    # Split the hidden tile into two halves inside the body only when the
    # halves stay >= 256 wide (keeps the MXU well-fed on v6e/v7x).
    n_sub = 2 if (th >= 512 and (th // 2) % 128 == 0) else 1
    sub = th // n_sub

    est = _vmem_estimate(tm, th, C, itemsize)
    vmem_limit = int(min(48 << 20, max(est + (4 << 20), 16 << 20)))

    # Streamed-weight design: weights are re-fetched once per row tile.
    weight_bytes = (Mp // tm) * (w_fc_t.size + w_proj_t.size) * itemsize
    cost = pl.CostEstimate(
        flops=4 * Mp * C * Hp + 2 * Mp * Hp,
        transcendentals=0,
        bytes_accessed=2 * Mp * C * itemsize + weight_bytes,
    )

    out = pl.pallas_call(
        _make_mlp_kernel(n_sub, sub),
        out_shape=jax.ShapeDtypeStruct((Mp, C), dtype),
        grid_spec=pltpu.PrefetchScalarGridSpec(
            num_scalar_prefetch=0,
            grid=grid,
            in_specs=[
                pl.BlockSpec((tm, C), lambda i, h: (i, 0)),   # activation rows
                pl.BlockSpec((C, th), lambda i, h: (0, h)),   # W_fc^T columns
                pl.BlockSpec((th, C), lambda i, h: (h, 0)),   # W_proj^T rows
            ],
            out_specs=pl.BlockSpec((tm, C), lambda i, h: (i, 0)),
            scratch_shapes=[pltpu.VMEM((tm, C), jnp.float32)],
        ),
        compiler_params=pltpu.CompilerParams(
            dimension_semantics=("parallel", "arbitrary"),
            vmem_limit_bytes=vmem_limit,
        ),
        cost_estimate=cost,
    )(x2, w_fc_t, w_proj_t)

    if Mp != M:
        out = out[:M]
    return out.reshape(*lead, C)


def mlp_reference(x, w_fc, w_proj):
    """Pure-JAX reference in f32, matching the PyTorch forward semantics."""
    xf = x.astype(jnp.float32)
    h = xf @ w_fc.astype(jnp.float32).T
    h = jnp.maximum(h, 0.0) ** 2
    return h @ w_proj.astype(jnp.float32).T


if __name__ == "__main__":
    # Small shapes consistent with the module: x (B, T, dim), hidden = 4*dim.
    B, T, dim = 2, 16, 128
    H = 4 * dim

    key = jax.random.PRNGKey(0)
    kx, k1, k2 = jax.random.split(key, 3)
    x_f32 = jax.random.normal(kx, (B, T, dim), dtype=jnp.float32)
    # Note: the PyTorch module zero-inits c_proj.weight; random weights here so
    # the forward pass is actually exercised (semantics identical regardless).
    w_fc = jax.random.normal(k1, (H, dim), dtype=jnp.float32) / math.sqrt(dim)
    w_proj = jax.random.normal(k2, (dim, H), dtype=jnp.float32) / math.sqrt(H)

    y_ref = mlp_reference(x_f32, w_fc, w_proj)

    # --- f32, default tiles (th=512 -> sub-chunked body, 1 reduction step) ---
    y = jax.block_until_ready(mlp_forward(x_f32, w_fc, w_proj))
    assert y.shape == x_f32.shape and y.dtype == x_f32.dtype
    assert jnp.allclose(y.astype(jnp.float32), y_ref, atol=5e-3, rtol=5e-3)

    # --- f32, th=256 -> exercises the multi-step reduction/accumulator path ---
    y2 = jax.block_until_ready(mlp_forward(x_f32, w_fc, w_proj, th=256))
    assert jnp.allclose(y2.astype(jnp.float32), y_ref, atol=5e-3, rtol=5e-3)

    # --- bf16 (CastedLinear mixed-precision path), loose tolerance ---
    x_bf16 = x_f32.astype(jnp.bfloat16)
    y_bf = jax.block_until_ready(mlp_forward(x_bf16, w_fc, w_proj))
    assert y_bf.shape == x_bf16.shape and y_bf.dtype == jnp.bfloat16
    assert jnp.allclose(y_bf.astype(jnp.float32), y_ref, atol=1e-1, rtol=1e-1)

    # --- non-tile-multiple row count -> exercises the row-padding path ---
    x_odd = jax.random.normal(kx, (3, 11, dim), dtype=jnp.float32)
    y_odd = jax.block_until_ready(mlp_forward(x_odd, w_fc, w_proj))
    assert jnp.allclose(
        y_odd.astype(jnp.float32),
        mlp_reference(x_odd, w_fc, w_proj),
        atol=5e-3, rtol=5e-3,
    )

    print("KERNEL_OK")
</pallas_src>

<mosaic_0001>
module attributes {stable_mosaic.version = 11 : i64} {
  func.func @kernel(%arg0: i32, %arg1: i32, %arg2: memref<32x128xf32, #tpu.memory_space<vmem>>, %arg3: memref<128x512xf32, #tpu.memory_space<vmem>>, %arg4: memref<512x128xf32, #tpu.memory_space<vmem>>, %arg5: memref<32x128xf32, #tpu.memory_space<vmem>>, %arg6: memref<32x128xf32, #tpu.memory_space<vmem>>) attributes {dimension_semantics = [#tpu.dimension_semantics<parallel>, #tpu.dimension_semantics<arbitrary>], iteration_bounds = array<i64: 1, 1>, scalar_prefetch = 0 : i64, scratch_operands = 1 : i64, tpu.core_type = #tpu.core_type<tc>, window_params = [{transform_indices = @transform_0, window_bounds = array<i64: 32, 128>}, {transform_indices = @transform_1, window_bounds = array<i64: 128, 512>}, {transform_indices = @transform_2, window_bounds = array<i64: 512, 128>}, {transform_indices = @transform_3, window_bounds = array<i64: 32, 128>}]} {
    %c0_i32 = arith.constant 0 : i32
    %0 = arith.cmpi eq, %arg1, %c0_i32 : i32
    %1 = arith.extui %0 : i1 to i32
    %c0_i32_0 = arith.constant 0 : i32
    %2 = arith.cmpi ne, %1, %c0_i32_0 : i32
    scf.if %2 {
      %cst_24 = arith.constant 0.000000e+00 : f32
      %27 = vector.broadcast %cst_24 : f32 to vector<32x128xf32>
      %c0_25 = arith.constant 0 : index
      %c0_26 = arith.constant 0 : index
      %28 = vector.load %arg6[%c0_25, %c0_26] : memref<32x128xf32, #tpu.memory_space<vmem>>, vector<32x128xf32>
      tpu.vector_store %arg6[%c0_25, %c0_26], %27 {strides = array<i32>} : memref<32x128xf32, #tpu.memory_space<vmem>>, vector<32x128xf32>,
    } else {
    }
    %c0 = arith.constant 0 : index
    %c0_1 = arith.constant 0 : index
    %3 = vector.load %arg2[%c0, %c0_1] : memref<32x128xf32, #tpu.memory_space<vmem>>, vector<32x128xf32>
    %c0_2 = arith.constant 0 : index
    %c0_3 = arith.constant 0 : index
    %4 = vector.load %arg3[%c0_2, %c0_3] : memref<128x512xf32, #tpu.memory_space<vmem>>, vector<128x256xf32>
    %cst = arith.constant dense<0.000000e+00> : vector<32x256xf32>
    %5 = tpu.matmul %3, %4, %cst {dimension_numbers = #tpu.dot_dimension_numbers<[1], [0], [0], [1], [0, 0, 1, 1], [], []>} : vector<32x128xf32>, vector<128x256xf32>, vector<32x256xf32> -> vector<32x256xf32>
    %cst_4 = arith.constant 0.000000e+00 : f32
    %6 = vector.broadcast %cst_4 : f32 to vector<32x256xf32>
    %7 = arith.maximumf %5, %6 : vector<32x256xf32>
    %8 = arith.mulf %7, %7 : vector<32x256xf32>
    %c0_5 = arith.constant 0 : index
    %c0_6 = arith.constant 0 : index
    %9 = vector.load %arg6[%c0_5, %c0_6] : memref<32x128xf32, #tpu.memory_space<vmem>>, vector<32x128xf32>
    %c0_7 = arith.constant 0 : index
    %c0_8 = arith.constant 0 : index
    %10 = vector.load %arg4[%c0_7, %c0_8] : memref<512x128xf32, #tpu.memory_space<vmem>>, vector<256x128xf32>
    %cst_9 = arith.constant dense<0.000000e+00> : vector<32x128xf32>
    %11 = tpu.matmul %8, %10, %cst_9 {dimension_numbers = #tpu.dot_dimension_numbers<[1], [0], [0], [1], [0, 0, 1, 1], [], []>} : vector<32x256xf32>, vector<256x128xf32>, vector<32x128xf32> -> vector<32x128xf32>
    %12 = arith.addf %9, %11 : vector<32x128xf32>
    %c0_10 = arith.constant 0 : index
    %c0_11 = arith.constant 0 : index
    %13 = vector.load %arg6[%c0_10, %c0_11] : memref<32x128xf32, #tpu.memory_space<vmem>>, vector<32x128xf32>
    tpu.vector_store %arg6[%c0_10, %c0_11], %12 {strides = array<i32>} : memref<32x128xf32, #tpu.memory_space<vmem>>, vector<32x128xf32>,
    %c0_12 = arith.constant 0 : index
    %c256 = arith.constant 256 : index
    %14 = vector.load %arg3[%c0_12, %c256] : memref<128x512xf32, #tpu.memory_space<vmem>>, vector<128x256xf32>
    %cst_13 = arith.constant dense<0.000000e+00> : vector<32x256xf32>
    %15 = tpu.matmul %3, %14, %cst_13 {dimension_numbers = #tpu.dot_dimension_numbers<[1], [0], [0], [1], [0, 0, 1, 1], [], []>} : vector<32x128xf32>, vector<128x256xf32>, vector<32x256xf32> -> vector<32x256xf32>
    %cst_14 = arith.constant 0.000000e+00 : f32
    %16 = vector.broadcast %cst_14 : f32 to vector<32x256xf32>
    %17 = arith.maximumf %15, %16 : vector<32x256xf32>
    %18 = arith.mulf %17, %17 : vector<32x256xf32>
    %c0_15 = arith.constant 0 : index
    %c0_16 = arith.constant 0 : index
    %19 = vector.load %arg6[%c0_15, %c0_16] : memref<32x128xf32, #tpu.memory_space<vmem>>, vector<32x128xf32>
    %c256_17 = arith.constant 256 : index
    %c0_18 = arith.constant 0 : index
    %20 = vector.load %arg4[%c256_17, %c0_18] : memref<512x128xf32, #tpu.memory_space<vmem>>, vector<256x128xf32>
    %cst_19 = arith.constant dense<0.000000e+00> : vector<32x128xf32>
    %21 = tpu.matmul %18, %20, %cst_19 {dimension_numbers = #tpu.dot_dimension_numbers<[1], [0], [0], [1], [0, 0, 1, 1], [], []>} : vector<32x256xf32>, vector<256x128xf32>, vector<32x128xf32> -> vector<32x128xf32>
    %22 = arith.addf %19, %21 : vector<32x128xf32>
    %c0_20 = arith.constant 0 : index
    %c0_21 = arith.constant 0 : index
    %23 = vector.load %arg6[%c0_20, %c0_21] : memref<32x128xf32, #tpu.memory_space<vmem>>, vector<32x128xf32>
    tpu.vector_store %arg6[%c0_20, %c0_21], %22 {strides = array<i32>} : memref<32x128xf32, #tpu.memory_space<vmem>>, vector<32x128xf32>,
    %c0_i32_22 = arith.constant 0 : i32
    %24 = arith.cmpi eq, %arg1, %c0_i32_22 : i32
    %25 = arith.extui %24 : i1 to i32
    %c0_i32_23 = arith.constant 0 : i32
    %26 = arith.cmpi ne, %25, %c0_i32_23 : i32
    scf.if %26 {
      %c0_24 = arith.constant 0 : index
      %c0_25 = arith.constant 0 : index
      %27 = vector.load %arg6[%c0_24, %c0_25] : memref<32x128xf32, #tpu.memory_space<vmem>>, vector<32x128xf32>
      %c0_26 = arith.constant 0 : index
      %c0_27 = arith.constant 0 : index
      %28 = vector.load %arg5[%c0_26, %c0_27] : memref<32x128xf32, #tpu.memory_space<vmem>>, vector<32x128xf32>
      tpu.vector_store %arg5[%c0_26, %c0_27], %27 {strides = array<i32>} : memref<32x128xf32, #tpu.memory_space<vmem>>, vector<32x128xf32>,
    } else {
    }
    return
  }
  func.func @transform_0(%arg0: i32, %arg1: i32) -> (i32, i32) {
    %c0_i32 = arith.constant 0 : i32
    %c0_i32_0 = arith.constant 0 : i32
    return %arg0, %c0_i32 : i32, i32
  }
  func.func @transform_1(%arg0: i32, %arg1: i32) -> (i32, i32) {
    %c0_i32 = arith.constant 0 : i32
    %c0_i32_0 = arith.constant 0 : i32
    return %c0_i32, %arg1 : i32, i32
  }
  func.func @transform_2(%arg0: i32, %arg1: i32) -> (i32, i32) {
    %c0_i32 = arith.constant 0 : i32
    %c0_i32_0 = arith.constant 0 : i32
    return %arg1, %c0_i32 : i32, i32
  }
  func.func @transform_3(%arg0: i32, %arg1: i32) -> (i32, i32) {
    %c0_i32 = arith.constant 0 : i32
    %c0_i32_0 = arith.constant 0 : i32
    return %arg0, %c0_i32 : i32, i32
  }
}

</mosaic_0001>

<bundles_post_ra>
// kernel: tpu_custom_call.1
= control target key start
LH: loop header
LB: loop body
LE: loop exit
PB: predicated region body
PF: predicated region fallthrough
CT: control target
= control target key end

     0   :  { %8 = vsyncpa [#allocation4], 0  ;;  %s1050_s0 = inlined_call_operand.hbm [shape: f32[32,128], index: 0, kind: input, shape index: {}]   ;;  %s1051_s1 = inlined_call_operand.hbm [shape: f32[128,512], index: 1, kind: input, shape index: {}]   ;;  %s1052_s2 = inlined_call_operand.hbm [shape: f32[512,128], index: 2, kind: input, shape index: {}]   ;;  %s1053_s3 = inlined_call_operand.hbm [shape: f32[32,128], index: 3, kind: output, shape index: {}]  }
   0x1   :  { %9 = vsyncpa [#allocation7], 0 }
   0x2   :  { %10 = vsyncpa [#allocation5], 0  ;;  %s948_s12 = smov [#allocation6]   ;;  %s854_s16 = scalar_lea.hbm %s1051_s1, 8192 }
   0x3   :  { %s28_s13 = sshll.u32 %s948_s12, 4  ;;  %p855_p0 = scmp.ne.s32.totalorder %s1051_s1, %s854_s16  ;;  %s29_s13 = int_to_ptr.vmem [resolvable:$true] %s28_s13 }
   0x4   :  { %p858_p1 = scmp.lt.u32.totalorder %s854_s16, %s1051_s1 }
   0x6   :  { %p860_p2 = pnand %p858_p1, %p855_p0 }
   0x8   :  { %863 = shalt.err (!%p860_p2)
}
   0x9   :  { %s864_s21 = scalar_lea.vmem %s29_s13, 8192  ;;  %p869_p4 = scmp.lt.s32.totalorder %s29_s13, %s29_s13 }
   0xa   :  { %p865_p3 = scmp.ne.s32.totalorder %s29_s13, %s864_s21  ;;  %p870_p5 = scmp.lt.s32.totalorder %s864_s21, %s864_s21 }
   0xc   :  { %p871_p6 = por %p870_p5, %p869_p4 }
   0xe   :  { %p872_p7 = pnand %p871_p6, %p865_p3 }
  0x10   :  { %875 = shalt.err (!%p872_p7)
}
  0x11   :  { %s949_s22 = smov 512   ;;  %s950_s23 = smov 32  }
  0x12   :  { %34 = dma.hbm_to_vmem [thread:$0]  %s1051_s1, 8192, %s29_s13, [#allocation7], %s949_s22, %s949_s22, %s950_s23  }
  0x13   :  { %s951_s26 = smov [#allocation3]   ;;  %s876_s30 = scalar_lea.hbm %s1050_s0, 512 }
  0x14   :  { %s16_s27 = sshll.u32 %s951_s26, 4  ;;  %p877_p8 = scmp.ne.s32.totalorder %s1050_s0, %s876_s30  ;;  %s17_s27 = int_to_ptr.vmem [resolvable:$true] %s16_s27 }
  0x15   :  { %p880_p9 = scmp.lt.u32.totalorder %s876_s30, %s1050_s0 }
  0x17   :  { %p882_p10 = pnand %p880_p9, %p877_p8 }
  0x19   :  { %885 = shalt.err (!%p882_p10)
}
  0x1a   :  { %s886_s8 = scalar_lea.vmem %s17_s27, 512  ;;  %p891_p12 = scmp.lt.s32.totalorder %s17_s27, %s17_s27 }
  0x1b   :  { %p887_p11 = scmp.ne.s32.totalorder %s17_s27, %s886_s8  ;;  %p892_p13 = scmp.lt.s32.totalorder %s886_s8, %s886_s8 }
  0x1d   :  { %p893_p0 = por %p892_p13, %p891_p12 }
  0x1f   :  { %p894_p1 = pnand %p893_p0, %p887_p11 }
  0x21   :  { %897 = shalt.err (!%p894_p1)
}
  0x22   :  { %s952_s1 = smov 128   ;;  %s953_s9 = smov 8  }
  0x23   :  { %22 = dma.hbm_to_vmem [thread:$0]  %s1050_s0, 512, %s17_s27, [#allocation4], %s952_s1, %s952_s1, %s953_s9  }
  0x24   :  { %s954_s12 = smov [#allocation8]   ;;  %s898_s16 = scalar_lea.hbm %s1052_s2, 8192 }
  0x25   :  { %s40_s13 = sshll.u32 %s954_s12, 4  ;;  %p899_p2 = scmp.ne.s32.totalorder %s1052_s2, %s898_s16  ;;  %s41_s13 = int_to_ptr.vmem [resolvable:$true] %s40_s13 }
  0x26   :  { %p902_p3 = scmp.lt.u32.totalorder %s898_s16, %s1052_s2 }
  0x28   :  { %p904_p4 = pnand %p902_p3, %p899_p2 }
  0x2a   :  { %907 = shalt.err (!%p904_p4)
}
  0x2b   :  { %s908_s21 = scalar_lea.vmem %s41_s13, 8192  ;;  %p913_p6 = scmp.lt.s32.totalorder %s41_s13, %s41_s13 }
  0x2c   :  { %p909_p5 = scmp.ne.s32.totalorder %s41_s13, %s908_s21  ;;  %p914_p7 = scmp.lt.s32.totalorder %s908_s21, %s908_s21 }
  0x2e   :  { %p915_p8 = por %p914_p7, %p913_p6 }
  0x30   :  { %p916_p9 = pnand %p915_p8, %p909_p5 }
  0x32   :  { %919 = shalt.err (!%p916_p9)
}
  0x33   :  { %46 = dma.hbm_to_vmem [thread:$0]  %s1052_s2, 8192, %s41_s13, [#allocation7], %s952_s1, %s952_s1, %s953_s9  }
  0x34   :  { %942 = dma.done.wait [#allocation4], 512  }
  0x35   :  { %943 = vsyncadd [#allocation4], 4294966784 }
  0x36   :  { %944 = dma.done.wait [#allocation7], 16384  }
  0x37   :  { %945 = vsyncadd [#allocation7], 4294950912  ;;  %v955_v0 = vmov 0.0   ;;  %v69_v1 = vld [vmem:[#allocation6 + $0x8] sm:$0xff]  ;;  %v68_v3 = vld [vmem:[#allocation6] sm:$0xff]  ;;  %s956_s2 = smov [#allocation9]  }
  0x38   :  { %164 = vmatprep.mubr.f32.mxu0 %v955_v0  ;;  %v71_v2 = vld [vmem:[#allocation6 + $0x28] sm:$0xff]  ;;  %v70_v5 = vld [vmem:[#allocation6 + $0x20] sm:$0xff]  ;;  %v227_v53 = vld [vmem:[#allocation8 + $0x90] sm:$0xff]  ;;  %s616_s23 = sshll.u32 %s956_s2, 4  ;;  %s617_s23 = int_to_ptr.vmem [resolvable:$true] %s616_s23 }
  0x39   :  { %v717_v4 = vpack.c.bf16 %v71_v2, %v69_v1  ;;  %v73_v6 = vld [vmem:[#allocation6 + $0x48] sm:$0xff]  ;;  %v719_v8 = vpack.c.bf16 %v70_v5, %v68_v3  ;;  %v72_v10 = vld [vmem:[#allocation6 + $0x40] sm:$0xff]  ;;  %v228_v54 = vld [vmem:[#allocation8 + $0x98] sm:$0xff]  ;;  %s920_s24 = scalar_lea.vmem %s617_s23, 512  ;;  %p925_p11 = scmp.lt.s32.totalorder %s617_s23, %s617_s23 }
  0x3a   :  { %v75_v7 = vld [vmem:[#allocation6 + $0x68] sm:$0xff]  ;;  %v74_v11 = vld [vmem:[#allocation6 + $0x60] sm:$0xff]  ;;  %v211_v55 = vld [vmem:[#allocation8 + $0x10] sm:$0xff]  ;;  %v753_v57 = vpack.c.bf16 %v228_v54, %v227_v53  ;;  %p921_p10 = scmp.ne.s32.totalorder %s617_s23, %s920_s24  ;;  %p926_p12 = scmp.lt.s32.totalorder %s920_s24, %s920_s24 }
  0x3b   :  { %v721_v9 = vpack.c.bf16 %v75_v7, %v73_v6  ;;  %v77_v12 = vld [vmem:[#allocation6 + $0x88] sm:$0xff]  ;;  %718 = vmatprep.subr.bf16.mxu0 %v717_v4  ;;  %v723_v14 = vpack.c.bf16 %v74_v11, %v72_v10  ;;  %v76_v16 = vld [vmem:[#allocation6 + $0x80] sm:$0xff]  ;;  %v212_v58 = vld [vmem:[#allocation8 + $0x18] sm:$0xff] }
  0x3c   :  { %v79_v13 = vld [vmem:[#allocation6 + $0xa8] sm:$0xff]  ;;  %720 = vmatpush1.bf16.msra.mxu0 %v719_v8  ;;  %v78_v17 = vld [vmem:[#allocation6 + $0xa0] sm:$0xff]  ;;  %v335_v61 = vld [vmem:[#allocation6 + $0x18] sm:$0xff]  ;;  %v755_v63 = vpack.c.bf16 %v212_v58, %v211_v55  ;;  %p927_p13 = por %p926_p12, %p925_p11 }
  0x3d   :  { %722 = vmatprep.subr.bf16.mxu0 %v721_v9  ;;  %v725_v15 = vpack.c.bf16 %v79_v13, %v77_v12  ;;  %v81_v18 = vld [vmem:[#allocation6 + $0xc8] sm:$0xff]  ;;  %v727_v20 = vpack.c.bf16 %v78_v17, %v76_v16  ;;  %v80_v22 = vld [vmem:[#allocation6 + $0xc0] sm:$0xff]  ;;  %v337_v62 = vld [vmem:[#allocation6 + $0x38] sm:$0xff] }
  0x3e   :  { %v83_v19 = vld [vmem:[#allocation6 + $0xe8] sm:$0xff]  ;;  %v82_v23 = vld [vmem:[#allocation6 + $0xe0] sm:$0xff]  ;;  %v781_v5 = vpack.c.bf16 %v337_v62, %v335_v61  ;;  %v334_v6 = vld [vmem:[#allocation6 + $0x10] sm:$0xff]  ;;  %p928_p0 = pnand %p927_p13, %p921_p10 }
  0x3f   :  { %v729_v21 = vpack.c.bf16 %v83_v19, %v81_v18  ;;  %v85_v24 = vld [vmem:[#allocation6 + $0x108] sm:$0xff]  ;;  %v731_v26 = vpack.c.bf16 %v82_v23, %v80_v22  ;;  %v84_v28 = vld [vmem:[#allocation6 + $0x100] sm:$0xff]  ;;  %v336_v7 = vld [vmem:[#allocation6 + $0x30] sm:$0xff] }
  0x40   :  { %724 = vmatpush1.bf16.msra.mxu0 %v723_v14  ;;  %v87_v25 = vld [vmem:[#allocation6 + $0x128] sm:$0xff]  ;;  %v86_v29 = vld [vmem:[#allocation6 + $0x120] sm:$0xff]  ;;  %v339_v8 = vld [vmem:[#allocation6 + $0x58] sm:$0xff]  ;;  %v783_v14 = vpack.c.bf16 %v336_v7, %v334_v6 }
  0x41   :  { %726 = vmatprep.subr.bf16.mxu0 %v725_v15  ;;  %v733_v27 = vpack.c.bf16 %v87_v25, %v85_v24  ;;  %v89_v30 = vld [vmem:[#allocation6 + $0x148] sm:$0xff]  ;;  %v735_v32 = vpack.c.bf16 %v86_v29, %v84_v28  ;;  %v88_v34 = vld [vmem:[#allocation6 + $0x140] sm:$0xff]  ;;  %v341_v9 = vld [vmem:[#allocation6 + $0x78] sm:$0xff] }
  0x42   :  { %v91_v31 = vld [vmem:[#allocation6 + $0x168] sm:$0xff]  ;;  %v90_v35 = vld [vmem:[#allocation6 + $0x160] sm:$0xff]  ;;  %v231_v10 = vld [vmem:[#allocation8 + $0xb0] sm:$0xff]  ;;  %v785_v17 = vpack.c.bf16 %v341_v9, %v339_v8 }
  0x43   :  { %v737_v33 = vpack.c.bf16 %v91_v31, %v89_v30  ;;  %v93_v36 = vld [vmem:[#allocation6 + $0x188] sm:$0xff]  ;;  %v739_v38 = vpack.c.bf16 %v90_v35, %v88_v34  ;;  %v92_v40 = vld [vmem:[#allocation6 + $0x180] sm:$0xff]  ;;  %v232_v11 = vld [vmem:[#allocation8 + $0xb8] sm:$0xff] }
  0x44   :  { %728 = vmatpush1.bf16.msra.mxu0 %v727_v20  ;;  %v95_v37 = vld [vmem:[#allocation6 + $0x1a8] sm:$0xff]  ;;  %v94_v41 = vld [vmem:[#allocation6 + $0x1a0] sm:$0xff]  ;;  %v215_v15 = vld [vmem:[#allocation8 + $0x30] sm:$0xff] }
  0x45   :  { %730 = vmatprep.subr.bf16.mxu0 %v729_v21  ;;  %v741_v39 = vpack.c.bf16 %v95_v37, %v93_v36  ;;  %v97_v42 = vld [vmem:[#allocation6 + $0x1c8] sm:$0xff]  ;;  %v225_v44 = vld [vmem:[#allocation8 + $0x80] sm:$0xff]  ;;  %v743_v50 = vpack.c.bf16 %v94_v41, %v92_v40  ;;  %v216_v16 = vld [vmem:[#allocation8 + $0x38] sm:$0xff]  ;;  %v761_v21 = vpack.c.bf16 %v232_v11, %v231_v10 }
  0x46   :  { %v99_v43 = vld [vmem:[#allocation6 + $0x1e8] sm:$0xff]  ;;  %v96_v45 = vld [vmem:[#allocation6 + $0x1c0] sm:$0xff]  ;;  %v338_v18 = vld [vmem:[#allocation6 + $0x50] sm:$0xff]  ;;  %v763_v25 = vpack.c.bf16 %v216_v16, %v215_v15 }
  0x47   :  { %v98_v46 = vld [vmem:[#allocation6 + $0x1e0] sm:$0xff]  ;;  %v226_v47 = vld [vmem:[#allocation8 + $0x88] sm:$0xff]  ;;  %v745_v56 = vpack.c.bf16 %v99_v43, %v97_v42  ;;  %v340_v19 = vld [vmem:[#allocation6 + $0x70] sm:$0xff] }
  0x48   :  { %732 = vmatpush1.bf16.msra.mxu0 %v731_v26  ;;  %v209_v48 = vld [vmem:[#allocation8] sm:$0xff]  ;;  %v210_v49 = vld [vmem:[#allocation8 + $0x8] sm:$0xff]  ;;  %v749_v51 = vpack.c.bf16 %v226_v47, %v225_v44  ;;  %v747_v1 = vpack.c.bf16 %v98_v46, %v96_v45  ;;  %v343_v20 = vld [vmem:[#allocation6 + $0x98] sm:$0xff]  ;;  %v787_v26 = vpack.c.bf16 %v340_v19, %v338_v18 }
  0x49   :  { %734 = vmatprep.subr.bf16.mxu0 %v733_v27  ;;  %v751_v52 = vpack.c.bf16 %v210_v49, %v209_v48  ;;  %v229_v59 = vld [vmem:[#allocation8 + $0xa0] sm:$0xff]  ;;  %v230_v60 = vld [vmem:[#allocation8 + $0xa8] sm:$0xff]  ;;  %v345_v22 = vld [vmem:[#allocation6 + $0xb8] sm:$0xff] }
  0x4a   :  { %750 = vmatprep.subr.bf16.mxu1 %v749_v51  ;;  %v757_v2 = vpack.c.bf16 %v230_v60, %v229_v59  ;;  %v213_v3 = vld [vmem:[#allocation8 + $0x20] sm:$0xff]  ;;  %v214_v4 = vld [vmem:[#allocation8 + $0x28] sm:$0xff]  ;;  %v789_v30 = vpack.c.bf16 %v345_v22, %v343_v20  ;;  %v342_v31 = vld [vmem:[#allocation6 + $0x90] sm:$0xff] }
  0x4b   :  { %752 = vmatpush3.bf16.msra.mxu1 %v751_v52  ;;  %v759_v12 = vpack.c.bf16 %v214_v4, %v213_v3  ;;  %v1020_v13 = vld [vmem:[#allocation3] sm:$0xff]  ;;  %v234_v24 = vld [vmem:[#allocation8 + $0xc8] sm:$0xff]  ;;  %v349_v35 = vld [vmem:[#allocation6 + $0xf8] sm:$0xff] }
  0x4c   :  { %736 = vmatpush1.bf16.msra.mxu0 %v735_v32  ;;  %754 = vmatprep.subr.bf16.mxu1 %v753_v57  ;;  %v233_v23 = vld [vmem:[#allocation8 + $0xc0] sm:$0xff]  ;;  %v1024_v27 = vld [vmem:[#allocation3 + $0x8] sm:$0xff]  ;;  %v344_v32 = vld [vmem:[#allocation6 + $0xb0] sm:$0xff] }
  0x4d   :  { %738 = vmatprep.subr.bf16.mxu0 %v737_v33  ;;  %v217_v28 = vld [vmem:[#allocation8 + $0x40] sm:$0xff]  ;;  %v218_v29 = vld [vmem:[#allocation8 + $0x48] sm:$0xff]  ;;  %v347_v33 = vld [vmem:[#allocation6 + $0xd8] sm:$0xff]  ;;  %v765_v34 = vpack.c.bf16 %v234_v24, %v233_v23 }
  0x4e   :  { %v235_v36 = vld [vmem:[#allocation8 + $0xd0] sm:$0xff]  ;;  %v236_v37 = vld [vmem:[#allocation8 + $0xd8] sm:$0xff]  ;;  %v793_v43 = vpack.c.bf16 %v349_v35, %v347_v33  ;;  %v237_v49 = vld [vmem:[#allocation8 + $0xe0] sm:$0xff] }
  0x4f   :  { %756 = vmatpush3.bf16.msra.mxu1 %v755_v63  ;;  %v66_v40 = vld [vmem:[#allocation3 + $0x10] sm:$0xff]  ;;  %v220_v42 = vld [vmem:[#allocation8 + $0x58] sm:$0xff]  ;;  %v769_v47 = vpack.c.bf16 %v236_v37, %v235_v36  ;;  %v221_v15 = vld [vmem:[#allocation8 + $0x60] sm:$0xff] }
  0x50   :  { %740 = vmatpush1.bf16.msra.mxu0 %v739_v38  ;;  %758 = vmatprep.subr.bf16.mxu1 %v757_v2  ;;  %v767_v38 = vpack.c.bf16 %v218_v29, %v217_v28  ;;  %v219_v41 = vld [vmem:[#allocation8 + $0x50] sm:$0xff]  ;;  %v351_v46 = vld [vmem:[#allocation6 + $0x118] sm:$0xff]  ;;  %v222_v16 = vld [vmem:[#allocation8 + $0x68] sm:$0xff] }
  0x51   :  { %742 = vmatprep.subr.bf16.mxu0 %v741_v39  ;;  %v791_v39 = vpack.c.bf16 %v344_v32, %v342_v31  ;;  %v346_v44 = vld [vmem:[#allocation6 + $0xd0] sm:$0xff]  ;;  %v353_v48 = vld [vmem:[#allocation6 + $0x138] sm:$0xff]  ;;  %v771_v51 = vpack.c.bf16 %v220_v42, %v219_v41  ;;  %v491_v23 = vld [vmem:[#allocation8 + $0x180] sm:$0xff] }
  0x52   :  { %v348_v45 = vld [vmem:[#allocation6 + $0xf0] sm:$0xff]  ;;  %v67_v53 = vld [vmem:[#allocation3 + $0x18] sm:$0xff]  ;;  %v797_v54 = vpack.c.bf16 %v353_v48, %v351_v46  ;;  %v492_v24 = vld [vmem:[#allocation8 + $0x188] sm:$0xff] }
  0x53   :  { %760 = vmatpush3.bf16.msra.mxu1 %v759_v12  ;;  %v795_v52 = vpack.c.bf16 %v348_v45, %v346_v44  ;;  %v350_v55 = vld [vmem:[#allocation6 + $0x110] sm:$0xff]  ;;  %v355_v58 = vld [vmem:[#allocation6 + $0x158] sm:$0xff]  ;;  %v475_v28 = vld [vmem:[#allocation8 + $0x100] sm:$0xff] }
  0x54   :  { %744 = vmatpush1.bf16.msra.mxu0 %v743_v50  ;;  %762 = vmatprep.subr.bf16.mxu1 %v761_v21  ;;  %v238_v50 = vld [vmem:[#allocation8 + $0xe8] sm:$0xff]  ;;  %v357_v59 = vld [vmem:[#allocation6 + $0x178] sm:$0xff]  ;;  %v354_v62 = vld [vmem:[#allocation6 + $0x150] sm:$0xff] }
  0x55   :  { %746 = vmatprep.subr.bf16.mxu0 %v745_v56  ;;  %v352_v56 = vld [vmem:[#allocation6 + $0x130] sm:$0xff]  ;;  %v773_v57 = vpack.c.bf16 %v238_v50, %v237_v49  ;;  %v801_v61 = vpack.c.bf16 %v357_v59, %v355_v58  ;;  %v361_v2 = vld [vmem:[#allocation6 + $0x1b8] sm:$0xff]  ;;  %v476_v29 = vld [vmem:[#allocation8 + $0x108] sm:$0xff] }
  0x56   :  { %v799_v60 = vpack.c.bf16 %v352_v56, %v350_v55  ;;  %v356_v63 = vld [vmem:[#allocation6 + $0x170] sm:$0xff]  ;;  %v363_v7 = vld [vmem:[#allocation6 + $0x1d8] sm:$0xff]  ;;  %v815_v35 = vpack.c.bf16 %v476_v29, %v475_v28  ;;  %v495_v42 = vld [vmem:[#allocation8 + $0x1a0] sm:$0xff] }
  0x57   :  { %764 = vmatpush3.bf16.msra.mxu1 %v763_v25  ;;  %v803_v3 = vpack.c.bf16 %v356_v63, %v354_v62  ;;  %v360_v6 = vld [vmem:[#allocation6 + $0x1b0] sm:$0xff]  ;;  %v365_v8 = vld [vmem:[#allocation6 + $0x1f8] sm:$0xff]  ;;  %v813_v25 = vpack.c.bf16 %v492_v24, %v491_v23  ;;  %v479_v50 = vld [vmem:[#allocation8 + $0x120] sm:$0xff] }
  0x58   :  { %748 = vmatpush1.bf16.msra.mxu0 %v747_v1  ;;  %766 = vmatprep.subr.bf16.mxu1 %v765_v34  ;;  %v359_v1 = vld [vmem:[#allocation6 + $0x198] sm:$0xff]  ;;  %v809_v10 = vpack.c.bf16 %v365_v8, %v363_v7  ;;  %v362_v11 = vld [vmem:[#allocation6 + $0x1d0] sm:$0xff]  ;;  %v488_v23 = vld [vmem:[#allocation8 + $0x168] sm:$0xff] }
  0x59   :  { %782 = vmatprep.subr.bf16.mxu0 %v781_v5  ;;  %v805_v4 = vpack.c.bf16 %v361_v2, %v359_v1  ;;  %v358_v5 = vld [vmem:[#allocation6 + $0x190] sm:$0xff]  ;;  %v240_v19 = vld [vmem:[#allocation8 + $0xf8] sm:$0xff] }
  0x5a   :  { %v807_v9 = vpack.c.bf16 %v360_v6, %v358_v5  ;;  %v364_v12 = vld [vmem:[#allocation6 + $0x1f0] sm:$0xff]  ;;  %v224_v22 = vld [vmem:[#allocation8 + $0x78] sm:$0xff] }
  0x5b   :  { %165 = vmatmul.mubr.f32.vlgmr.msra.gmra.mrb[0].mxu0 %v1020_v13  ;;  %768 = vmatpush3.bf16.msra.mxu1 %v767_v38  ;;  %v239_v18 = vld [vmem:[#allocation8 + $0xf0] sm:$0xff]  ;;  %v494_v32 = vld [vmem:[#allocation8 + $0x198] sm:$0xff] }
  0x5c   :  { %784 = vmatpush1.bf16.msra.mxu0 %v783_v14  ;;  %170 = vmatprep.mubr.f32.mxu0 %v955_v0  ;;  %v811_v14 = vpack.c.bf16 %v364_v12, %v362_v11  ;;  %v777_v20 = vpack.c.bf16 %v240_v19, %v239_v18  ;;  %v223_v21 = vld [vmem:[#allocation8 + $0x70] sm:$0xff]  ;;  %v498_v55 = vld [vmem:[#allocation8 + $0x1b8] sm:$0xff]  ;;  %v484_v11 = vld [vmem:[#allocation8 + $0x148] sm:$0xff] }
  0x5d   :  { %786 = vmatprep.subr.bf16.mxu0 %v785_v17  ;;  %770 = vmatprep.subr.bf16.mxu1 %v769_v47  ;;  %v775_v17 = vpack.c.bf16 %v222_v16, %v221_v15  ;;  %v493_v31 = vld [vmem:[#allocation8 + $0x190] sm:$0xff]  ;;  %v482_v63 = vld [vmem:[#allocation8 + $0x138] sm:$0xff]  ;;  %v503_v19 = vld [vmem:[#allocation8 + $0x1e0] sm:$0xff] }
  0x5e   :  { %v817_v37 = vpack.c.bf16 %v494_v32, %v493_v31  ;;  %v477_v38 = vld [vmem:[#allocation8 + $0x110] sm:$0xff]  ;;  %v486_v18 = vld [vmem:[#allocation8 + $0x158] sm:$0xff] }
  0x5f   :  { %171 = vmatmul.mubr.f32.gmra.mrb[2].mxu0 %v1024_v27  ;;  %772 = vmatpush3.bf16.msra.mxu1 %v771_v51  ;;  %v480_v51 = vld [vmem:[#allocation8 + $0x128] sm:$0xff]  ;;  %v481_v62 = vld [vmem:[#allocation8 + $0x130] sm:$0xff]  ;;  %v490_v28 = vld [vmem:[#allocation8 + $0x178] sm:$0xff] }
  0x60   :  { %788 = vmatpush1.bf16.msra.mxu0 %v787_v26  ;;  %176 = vmatprep.mubr.f32.mxu0 %v955_v0  ;;  %v823_v58 = vpack.c.bf16 %v480_v51, %v479_v50  ;;  %v827_v7 = vpack.c.bf16 %v482_v63, %v481_v62  ;;  %v501_v12 = vld [vmem:[#allocation8 + $0x1d0] sm:$0xff] }
  0x61   :  { %790 = vmatprep.subr.bf16.mxu0 %v789_v30  ;;  %774 = vmatprep.subr.bf16.mxu1 %v773_v57  ;;  %v505_v24 = vld [vmem:[#allocation8 + $0x1f0] sm:$0xff] }
  0x63   :  { %177 = vmatmul.mubr.f32.gmra.mrb[4].mxu0 %v66_v40  ;;  %776 = vmatpush3.bf16.msra.mxu1 %v775_v17  ;;  %v485_v17 = vld [vmem:[#allocation8 + $0x150] sm:$0xff] }
  0x64   :  { %792 = vmatpush1.bf16.msra.mxu0 %v791_v39  ;;  %182 = vmatprep.mubr.f32.mxu0 %v955_v0  ;;  %v478_v39 = vld [vmem:[#allocation8 + $0x118] sm:$0xff] }
  0x65   :  { %794 = vmatprep.subr.bf16.mxu0 %v793_v43  ;;  %778 = vmatprep.subr.bf16.mxu1 %v777_v20  ;;  %v496_v43 = vld [vmem:[#allocation8 + $0x1a8] sm:$0xff]  ;;  %v819_v46 = vpack.c.bf16 %v478_v39, %v477_v38 }
  0x66   :  { %v821_v49 = vpack.c.bf16 %v496_v43, %v495_v42  ;;  %v504_v20 = vld [vmem:[#allocation8 + $0x1e8] sm:$0xff] }
  0x67   :  { %183 = vmatmul.mubr.f32.gmra.mrb[6].mxu0 %v67_v53 }
  0x68   :  { %796 = vmatpush1.bf16.msra.mxu0 %v795_v52  ;;  %430 = vmatprep.mubr.f32.mxu0 %v955_v0 }
  0x69   :  { %798 = vmatprep.subr.bf16.mxu0 %v797_v54  ;;  %v497_v54 = vld [vmem:[#allocation8 + $0x1b0] sm:$0xff] }
  0x6c   :  { %800 = vmatpush1.bf16.msra.mxu0 %v799_v60 }
  0x6d   :  { %802 = vmatprep.subr.bf16.mxu0 %v801_v61  ;;  %v825_v61 = vpack.c.bf16 %v498_v55, %v497_v54 }
  0x70   :  { %804 = vmatpush1.bf16.msra.mxu0 %v803_v3  ;;  %v499_v3 = vld [vmem:[#allocation8 + $0x1c0] sm:$0xff] }
  0x71   :  { %806 = vmatprep.subr.bf16.mxu0 %v805_v4  ;;  %v500_v4 = vld [vmem:[#allocation8 + $0x1c8] sm:$0xff] }
  0x74   :  { %808 = vmatpush1.bf16.msra.mxu0 %v807_v9  ;;  %v829_v9 = vpack.c.bf16 %v500_v4, %v499_v3 }
  0x75   :  { %810 = vmatprep.subr.bf16.mxu0 %v809_v10  ;;  %v483_v10 = vld [vmem:[#allocation8 + $0x140] sm:$0xff] }
  0x76   :  { %v831_v15 = vpack.c.bf16 %v484_v11, %v483_v10 }
  0x78   :  { %812 = vmatpush1.bf16.msra.mxu0 %v811_v14  ;;  %v502_v14 = vld [vmem:[#allocation8 + $0x1d8] sm:$0xff] }
  0x79   :  { %v833_v16 = vpack.c.bf16 %v502_v14, %v501_v12 }
  0x7b   :  { %431 = vmatmul.mubr.f32.vlgmr.msra.gmra.mrb[8].mxu0 %v1020_v13  ;;  %v779_v13 = vpack.c.bf16 %v224_v22, %v223_v21  ;;  %v835_v21 = vpack.c.bf16 %v486_v18, %v485_v17  ;;  %v837_v22 = vpack.c.bf16 %v504_v20, %v503_v19 }
  0x7c   :  { %436 = vmatprep.mubr.f32.mxu0 %v955_v0 }
  0x7d   :  { %780 = vmatpush3.bf16.msra.mxu1 %v779_v13  ;;  %v487_v13 = vld [vmem:[#allocation8 + $0x160] sm:$0xff] }
  0x7e   :  { %814 = vmatprep.subr.bf16.mxu1 %v813_v25  ;;  %v506_v25 = vld [vmem:[#allocation8 + $0x1f8] sm:$0xff] }
  0x7f   :  { %437 = vmatmul.mubr.f32.gmra.mrb[10].mxu0 %v1024_v27 }
  0x80   :  { %442 = vmatprep.mubr.f32.mxu0 %v955_v0 }
  0x83   :  { %443 = vmatmul.mubr.f32.gmra.mrb[12].mxu0 %v66_v40 }
  0x84   :  { %448 = vmatprep.mubr.f32.mxu0 %v955_v0 }
  0x87   :  { %449 = vmatmul.mubr.f32.gmra.mrb[14].mxu0 %v67_v53 }
 0x12e   :  { %v166_v26 = vpop.f32.mrb[0].mxu0 }
 0x12f   :  { %v189_v27 = vmax.f32 %v166_v26, 0.0  ;;  %v168_v0 = vpop.f32.mrb[1].mxu0  ;;  %v839_v26 = vpack.c.bf16 %v488_v23, %v487_v13 }
 0x130   :  { %v190_v30 = vmax.f32 %v168_v0, 0.0  ;;  %v489_v0 = vld [vmem:[#allocation8 + $0x170] sm:$0xff] }
 0x131   :  { %v197_v33 = vmul.f32 %v189_v27, %v189_v27  ;;  %v841_v27 = vpack.c.bf16 %v506_v25, %v505_v24 }
 0x132   :  { %v198_v34 = vmul.f32 %v190_v30, %v190_v30  ;;  %v172_v36 = vpop.f32.mrb[2].mxu0  ;;  %v843_v30 = vpack.c.bf16 %v490_v28, %v489_v0 }
 0x133   :  { %v191_v40 = vmax.f32 %v172_v36, 0.0  ;;  %v174_v41 = vpop.f32.mrb[3].mxu0 }
 0x134   :  { %305 = vmatprep.mubr.f32.mxu1 %v198_v34  ;;  %v192_v44 = vmax.f32 %v174_v41, 0.0 }
 0x135   :  { %306 = vmatmul.mubr.f32.vlgmr.msra.gmra.mrb[0].mxu1 %v197_v33  ;;  %v199_v45 = vmul.f32 %v191_v40, %v191_v40 }
 0x136   :  { %816 = vmatpush3.bf16.msra.mxu1 %v815_v35  ;;  %v200_v47 = vmul.f32 %v192_v44, %v192_v44  ;;  %v178_v48 = vpop.f32.mrb[4].mxu0 }
 0x137   :  { %818 = vmatprep.subr.bf16.mxu1 %v817_v37  ;;  %v193_v52 = vmax.f32 %v178_v48, 0.0  ;;  %v180_v53 = vpop.f32.mrb[5].mxu0 }
 0x138   :  { %v194_v56 = vmax.f32 %v180_v53, 0.0  ;;  %310 = vmatprep.mubr.f32.mxu1 %v200_v47 }
 0x139   :  { %v201_v57 = vmul.f32 %v193_v52, %v193_v52  ;;  %311 = vmatmul.mubr.f32.gmra.mrb[2].mxu1 %v199_v45 }
 0x13a   :  { %820 = vmatpush3.bf16.msra.mxu1 %v819_v46  ;;  %v202_v59 = vmul.f32 %v194_v56, %v194_v56  ;;  %v184_v60 = vpop.f32.mrb[6].mxu0 }
 0x13b   :  { %822 = vmatprep.subr.bf16.mxu1 %v821_v49  ;;  %v195_v1 = vmax.f32 %v184_v60, 0.0  ;;  %v186_v2 = vpop.f32.mrb[7].mxu0 }
 0x13c   :  { %v196_v5 = vmax.f32 %v186_v2, 0.0  ;;  %315 = vmatprep.mubr.f32.mxu1 %v202_v59 }
 0x13d   :  { %v203_v6 = vmul.f32 %v195_v1, %v195_v1  ;;  %316 = vmatmul.mubr.f32.gmra.mrb[4].mxu1 %v201_v57 }
 0x13e   :  { %824 = vmatpush3.bf16.msra.mxu1 %v823_v58  ;;  %v204_v8 = vmul.f32 %v196_v5, %v196_v5 }
 0x13f   :  { %826 = vmatprep.subr.bf16.mxu1 %v825_v61 }
 0x140   :  { %320 = vmatprep.mubr.f32.mxu1 %v204_v8 }
 0x141   :  { %321 = vmatmul.mubr.f32.gmra.mrb[6].mxu1 %v203_v6 }
 0x142   :  { %828 = vmatpush3.bf16.msra.mxu1 %v827_v7 }
 0x143   :  { %830 = vmatprep.subr.bf16.mxu1 %v829_v9 }
 0x146   :  { %832 = vmatpush3.bf16.msra.mxu1 %v831_v15 }
 0x147   :  { %834 = vmatprep.subr.bf16.mxu1 %v833_v16 }
 0x14a   :  { %836 = vmatpush3.bf16.msra.mxu1 %v835_v21 }
 0x14b   :  { %838 = vmatprep.subr.bf16.mxu1 %v837_v22 }
 0x14e   :  { %v432_v29 = vpop.f32.mrb[8].mxu0  ;;  %840 = vmatpush3.bf16.msra.mxu1 %v839_v26 }
 0x14f   :  { %v455_v31 = vmax.f32 %v432_v29, 0.0  ;;  %v434_v32 = vpop.f32.mrb[9].mxu0  ;;  %842 = vmatprep.subr.bf16.mxu1 %v841_v27 }
 0x150   :  { %v456_v33 = vmax.f32 %v434_v32, 0.0 }
 0x151   :  { %v463_v36 = vmul.f32 %v455_v31, %v455_v31 }
 0x152   :  { %v464_v34 = vmul.f32 %v456_v33, %v456_v33  ;;  %v438_v35 = vpop.f32.mrb[10].mxu0  ;;  %844 = vmatpush3.bf16.msra.mxu1 %v843_v30 }
 0x153   :  { %v457_v37 = vmax.f32 %v438_v35, 0.0  ;;  %v440_v38 = vpop.f32.mrb[11].mxu0 }
 0x154   :  { %v458_v39 = vmax.f32 %v440_v38, 0.0  ;;  %571 = vmatprep.mubr.f32.mxu1 %v464_v34 }
 0x155   :  { %572 = vmatmul.mubr.f32.vlgmr.msra.gmra.mrb[8].mxu1 %v463_v36  ;;  %v465_v42 = vmul.f32 %v457_v37, %v457_v37 }
 0x156   :  { %v466_v40 = vmul.f32 %v458_v39, %v458_v39  ;;  %v444_v41 = vpop.f32.mrb[12].mxu0 }
 0x157   :  { %v459_v43 = vmax.f32 %v444_v41, 0.0  ;;  %v446_v44 = vpop.f32.mrb[13].mxu0 }
 0x158   :  { %v460_v45 = vmax.f32 %v446_v44, 0.0  ;;  %576 = vmatprep.mubr.f32.mxu1 %v466_v40 }
 0x159   :  { %577 = vmatmul.mubr.f32.gmra.mrb[10].mxu1 %v465_v42  ;;  %v467_v48 = vmul.f32 %v459_v43, %v459_v43 }
 0x15a   :  { %v468_v46 = vmul.f32 %v460_v45, %v460_v45  ;;  %v450_v47 = vpop.f32.mrb[14].mxu0 }
 0x15b   :  { %v461_v49 = vmax.f32 %v450_v47, 0.0  ;;  %v452_v50 = vpop.f32.mrb[15].mxu0 }
 0x15c   :  { %v462_v51 = vmax.f32 %v452_v50, 0.0  ;;  %581 = vmatprep.mubr.f32.mxu1 %v468_v46 }
 0x15d   :  { %582 = vmatmul.mubr.f32.gmra.mrb[12].mxu1 %v467_v48  ;;  %v469_v53 = vmul.f32 %v461_v49, %v461_v49 }
 0x15e   :  { %v470_v52 = vmul.f32 %v462_v51, %v462_v51 }
 0x160   :  { %586 = vmatprep.mubr.f32.mxu1 %v470_v52 }
 0x161   :  { %587 = vmatmul.mubr.f32.gmra.mrb[14].mxu1 %v469_v53 }
 0x208   :  { %v661_v54 = vpop.f32.mrb[0].mxu1 }
 0x209   :  { %v662_v55 = vpop.f32.mrb[1].mxu1 }
 0x20a   :  { %v663_v56 = vadd.f32 %v662_v55, %v661_v54 }
 0x20c   :  { %v664_v57 = vpop.f32.mrb[2].mxu1 }
 0x20d   :  { %v665_v58 = vpop.f32.mrb[3].mxu1 }
 0x20e   :  { %v666_v59 = vadd.f32 %v665_v58, %v664_v57 }
 0x210   :  { %v667_v60 = vpop.f32.mrb[4].mxu1 }
 0x211   :  { %v668_v61 = vpop.f32.mrb[5].mxu1 }
 0x212   :  { %v669_v62 = vadd.f32 %v668_v61, %v667_v60 }
 0x214   :  { %v670_v63 = vpop.f32.mrb[6].mxu1 }
 0x215   :  { %v671_v1 = vpop.f32.mrb[7].mxu1 }
 0x216   :  { %v672_v2 = vadd.f32 %v671_v1, %v670_v63 }
 0x228   :  { %v705_v3 = vpop.f32.mrb[8].mxu1 }
 0x229   :  { %v706_v4 = vpop.f32.mrb[9].mxu1 }
 0x22a   :  { %v707_v5 = vadd.f32 %v706_v4, %v705_v3 }
 0x22c   :  { %v592_v6 = vadd.f32 %v707_v5, %v663_v56  ;;  %v708_v7 = vpop.f32.mrb[10].mxu1 }
 0x22d   :  { %v709_v8 = vpop.f32.mrb[11].mxu1 }
 0x22e   :  { %607 = vst [vmem:[#allocation9] sm:$0xff] %v592_v6  ;;  %v710_v9 = vadd.f32 %v709_v8, %v708_v7 }
 0x230   :  { %v593_v10 = vadd.f32 %v710_v9, %v666_v59  ;;  %v711_v11 = vpop.f32.mrb[12].mxu1 }
 0x231   :  { %v712_v12 = vpop.f32.mrb[13].mxu1 }
 0x232   :  { %608 = vst [vmem:[#allocation9 + $0x8] sm:$0xff] %v593_v10  ;;  %v713_v14 = vadd.f32 %v712_v12, %v711_v11 }
 0x234   :  { %v594_v15 = vadd.f32 %v713_v14, %v669_v62  ;;  %v714_v16 = vpop.f32.mrb[14].mxu1 }
 0x235   :  { %v715_v17 = vpop.f32.mrb[15].mxu1 }
 0x236   :  { %609 = vst [vmem:[#allocation9 + $0x10] sm:$0xff] %v594_v15  ;;  %v716_v18 = vadd.f32 %v715_v17, %v714_v16 }
 0x238   :  { %v595_v19 = vadd.f32 %v716_v18, %v672_v2 }
 0x23a   :  { %610 = vst [vmem:[#allocation9 + $0x18] sm:$0xff] %v595_v19 }
 0x23b   :  { %931 = shalt.err (!%p928_p0)
}
 0x23c   :  { %s932_s27 = scalar_lea.hbm %s1053_s3, 512 }
 0x23d   :  { %p933_p1 = scmp.ne.s32.totalorder %s1053_s3, %s932_s27  ;;  %p936_p2 = scmp.lt.u32.totalorder %s932_s27, %s1053_s3 }
 0x23f   :  { %p938_p3 = pnand %p936_p2, %p933_p1 }
 0x241   :  { %941 = shalt.err (!%p938_p3)
}
 0x242   :  { %622 = dma.vmem_to_hbm [thread:$0]  %s617_s23, 512, %s1053_s3, [#allocation5], %s952_s1, %s952_s1, %s953_s9  }
 0x243   :  { %946 = dma.done.wait [#allocation5], 512  }
 0x244   :  { %947 = vsyncadd [#allocation5], 4294966784 }
 0x245   :  { %626 = vsyncpa [#allocation4], 1 }
 0x246   :  { %627 = vsyncpa [#allocation7], 1 }
 0x247   :  { %628 = vsyncpa [#allocation5], 1 }

</bundles_post_ra>
